<compile_context>
chip_gen: v7x
topology: tpu7x:2x2x1
jax: 0.10.0
libtpu: 0.0.40
codegen_flags: <defaults>
</compile_context>

<pallas_src>
import jax
import jax.numpy as jnp
import numpy as np
from jax.experimental import pallas as pl
from jax.experimental.pallas import tpu as pltpu

LANE = 128   # f32 lane tile
SUB = 8      # f32 sublane tile


def _round_up(x, m):
    return ((x + m - 1) // m) * m


# ---------------------------------------------------------------------------
# Parameter init (mirrors the PyTorch __init__: uniform(-l, l) with
# l = 1/sqrt(weight.size(0)) == 1/sqrt(out_features)); weights stored
# transposed as (in, out) so every dot output is lane-major.
# ---------------------------------------------------------------------------
def init_critic_params(key, input_shape, output_shape, hidden_layer_dims):
    s_dim = input_shape[0]
    a_dim = output_shape[0]
    dims = [s_dim + a_dim] + list(hidden_layer_dims) + [output_shape[0], 1]
    raw = []
    for i in range(len(dims) - 1):
        din, dout = dims[i], dims[i + 1]
        key, kw, kb = jax.random.split(key, 3)
        lim = 1.0 / np.sqrt(dout)   # PyTorch weight is (out, in); size(0) == out
        w = jax.random.uniform(kw, (din, dout), jnp.float32, -lim, lim)
        b = jax.random.uniform(kb, (dout,), jnp.float32, -lim, lim)
        raw.append((w, b))
    return raw


# ---------------------------------------------------------------------------
# Pack every parameter into one tile-aligned (rows, 128) f32 slab (one DMA).
# Layout (all row starts multiples of 8, all lane extents zero-padded to 128):
#   W_s (s_dim rows) | W_a (a_dim rows) | b0 (1 row)
#   per middle layer: W_i zero-padded to (128, 128) | b_i (1 row)
#   head: w_head as a (1, 128) row vector | b_head (1 row, col 0)
# Zero padding is exact through matmul / bias / relu, so the kernel never has
# to lane-slice activations.
# ---------------------------------------------------------------------------
def pack_critic_params(raw_params, s_dim, a_dim):
    np_params = [(np.asarray(w, np.float32), np.asarray(b, np.float32).reshape(1, -1))
                 for (w, b) in raw_params]
    dims = [s_dim + a_dim] + [w.shape[1] for (w, _) in np_params]
    assert max(dims) <= LANE, "packer assumes every layer width <= 128"

    blocks = []
    row = 0

    def add(arr):  # zero-pad lanes to 128; align the NEXT block start to 8 rows
        nonlocal row
        r0 = row
        padded = np.zeros((arr.shape[0], LANE), np.float32)
        padded[:, : arr.shape[1]] = arr
        blocks.append((r0, padded))
        row = r0 + _round_up(arr.shape[0], SUB)
        return r0

    layout = {"s_dim": s_dim, "a_dim": a_dim, "dims": tuple(dims)}

    w0, b0 = np_params[0]
    assert w0.shape[0] == s_dim + a_dim
    layout["ws_row"] = add(w0[:s_dim, :])   # concat fold: cat(s,a)@W0 == s@W_s + a@W_a
    layout["wa_row"] = add(w0[s_dim:, :])
    layout["b0_row"] = add(b0)

    mid = []
    for (w, b) in np_params[1:-1]:
        wp = np.zeros((LANE, w.shape[1]), np.float32)   # pad rows to 128 so the
        wp[: w.shape[0], :] = w                         # (B,128) activation multiplies through
        mid.append((add(wp), add(b)))
    layout["mid"] = tuple(mid)

    wh, bh = np_params[-1]                  # (a_dim, 1), (1, 1)
    layout["head_w_row"] = add(wh.T)        # stored as a row vector for the VPU head
    layout["head_b_row"] = add(bh)

    layout["rows"] = row
    slab = np.zeros((row, LANE), np.float32)
    for r0, arr in blocks:
        slab[r0:r0 + arr.shape[0], :] = arr
    return jnp.asarray(slab), layout


# ---------------------------------------------------------------------------
# Fused kernel: the whole critic MLP in one body, parameters from one slab.
# ---------------------------------------------------------------------------
def _make_critic_kernel(layout):
    s_dim, a_dim = layout["s_dim"], layout["a_dim"]
    ws_r, wa_r, b0_r = layout["ws_row"], layout["wa_row"], layout["b0_row"]
    mid = layout["mid"]
    hw_r, hb_r = layout["head_w_row"], layout["head_b_row"]
    hi = jax.lax.Precision.HIGHEST

    def kernel(s_ref, a_ref, p_ref, o_ref):
        # Layer 0: relu(cat([s, a]) @ W0 + b0) with the concat folded into two
        # dots against the pre-split W_s / W_a blocks (split hoisted to init).
        x = jnp.dot(s_ref[...], p_ref[ws_r:ws_r + s_dim, :],
                    preferred_element_type=jnp.float32, precision=hi)
        x = x + jnp.dot(a_ref[...], p_ref[wa_r:wa_r + a_dim, :],
                        preferred_element_type=jnp.float32, precision=hi)
        x = jnp.maximum(x + p_ref[b0_r:b0_r + 1, :], 0.0)

        # Middle layers (ReLU on all): weights are zero-padded (128,128) blocks,
        # so activations stay (B, 128) with exact-zero lanes in the padding.
        for (w_r, b_r) in mid:
            x = jnp.dot(x, p_ref[w_r:w_r + LANE, :],
                        preferred_element_type=jnp.float32, precision=hi)
            x = jnp.maximum(x + p_ref[b_r:b_r + 1, :], 0.0)

        # Q head (A -> 1, no ReLU) on the VPU/XLU: lane-wise multiply + lane
        # reduce avoids an MXU push/drain for an N=1 matmul on the serial tail.
        w_head = p_ref[hw_r:hw_r + 1, :]      # (1, 128), zero-padded row vector
        b_head = p_ref[hb_r:hb_r + 1, 0:1]    # (1, 1)
        q = jnp.sum(x * w_head, axis=-1, keepdims=True) + b_head
        o_ref[...] = q.astype(o_ref.dtype)

    return kernel


def _vmem_full_spec(shape):
    return pl.BlockSpec(shape, lambda: (0,) * len(shape),
                        memory_space=pltpu.MemorySpace.VMEM)


# ---------------------------------------------------------------------------
# Wrapper: single grid point, full-array VMEM blocks (3 input DMAs total).
# ---------------------------------------------------------------------------
def make_critic_forward(layout, batch, dtype=jnp.float32):
    kernel = _make_critic_kernel(layout)
    s_dim, a_dim = layout["s_dim"], layout["a_dim"]
    dims = layout["dims"]
    rows = layout["rows"]

    flops = 2 * batch * sum(d0 * d1 for d0, d1 in zip(dims[:-1], dims[1:]))
    bytes_accessed = rows * LANE * 4 + batch * (s_dim + a_dim + 1) * 4

    fwd = pl.pallas_call(
        kernel,
        out_shape=jax.ShapeDtypeStruct((batch, 1), dtype),
        in_specs=[_vmem_full_spec((batch, s_dim)),
                  _vmem_full_spec((batch, a_dim)),
                  _vmem_full_spec((rows, LANE))],
        out_specs=_vmem_full_spec((batch, 1)),
        cost_estimate=pl.CostEstimate(flops=flops, transcendentals=0,
                                      bytes_accessed=bytes_accessed),
    )
    return jax.jit(lambda states, actions, param_slab: fwd(states, actions, param_slab))


# ---------------------------------------------------------------------------
# Pure-JAX reference (f32 HIGHEST, matching the kernel's explicit precision)
# ---------------------------------------------------------------------------
def critic_forward_ref(raw_params, states, actions):
    hi = jax.lax.Precision.HIGHEST
    x = jnp.concatenate([states, actions], axis=1)
    for (w, b) in raw_params[:-1]:
        x = jax.nn.relu(jnp.dot(x, w, precision=hi) + b)
    w, b = raw_params[-1]
    return jnp.dot(x, w, precision=hi) + b


if __name__ == "__main__":
    key = jax.random.PRNGKey(0)

    # Module configuration (small, consistent with the forward pass)
    input_shape = (16,)          # state dim
    output_shape = (4,)          # action dim
    hidden_layer_dims = [32, 32]
    batch = 8

    k_params, k_s, k_a = jax.random.split(key, 3)
    raw_params = init_critic_params(k_params, input_shape, output_shape, hidden_layer_dims)
    param_slab, layout = pack_critic_params(raw_params, input_shape[0], output_shape[0])

    states = jax.random.normal(k_s, (batch, input_shape[0]), jnp.float32)
    actions = jax.random.normal(k_a, (batch, output_shape[0]), jnp.float32)

    critic_forward = make_critic_forward(layout, batch)
    q = jax.block_until_ready(critic_forward(states, actions, param_slab))

    q_ref = critic_forward_ref(raw_params, states, actions)
    np.testing.assert_allclose(np.asarray(q), np.asarray(q_ref), rtol=1e-4, atol=1e-5)
    assert q.shape == (batch, 1)

    print("KERNEL_OK")
</pallas_src>

<mosaic_0001>
module attributes {stable_mosaic.version = 11 : i64} {
  func.func @kernel(%arg0: memref<8x16xf32, #tpu.memory_space<vmem>>, %arg1: memref<8x4xf32, #tpu.memory_space<vmem>>, %arg2: memref<320x128xf32, #tpu.memory_space<vmem>>, %arg3: memref<8x1xf32, #tpu.memory_space<vmem>>) attributes {dimension_semantics = [], scalar_prefetch = 0 : i64, scratch_operands = 0 : i64, tpu.core_type = #tpu.core_type<tc>} {
    %c0 = arith.constant 0 : index
    %c0_0 = arith.constant 0 : index
    %0 = vector.load %arg0[%c0, %c0_0] : memref<8x16xf32, #tpu.memory_space<vmem>>, vector<8x16xf32>
    %c0_1 = arith.constant 0 : index
    %c0_2 = arith.constant 0 : index
    %1 = vector.load %arg2[%c0_1, %c0_2] : memref<320x128xf32, #tpu.memory_space<vmem>>, vector<16x128xf32>
    %cst = arith.constant dense<0.000000e+00> : vector<8x128xf32>
    %2 = tpu.matmul %0, %1, %cst {dimension_numbers = #tpu.dot_dimension_numbers<[1], [0], [0], [1], [0, 0, 1, 1], [], []>, precision = #tpu.contract_precision<fp32>} : vector<8x16xf32>, vector<16x128xf32>, vector<8x128xf32> -> vector<8x128xf32>
    %c0_3 = arith.constant 0 : index
    %c0_4 = arith.constant 0 : index
    %3 = vector.load %arg1[%c0_3, %c0_4] : memref<8x4xf32, #tpu.memory_space<vmem>>, vector<8x4xf32>
    %c16 = arith.constant 16 : index
    %c0_5 = arith.constant 0 : index
    %4 = vector.load %arg2[%c16, %c0_5] : memref<320x128xf32, #tpu.memory_space<vmem>>, vector<4x128xf32>
    %cst_6 = arith.constant dense<0.000000e+00> : vector<8x128xf32>
    %5 = tpu.matmul %3, %4, %cst_6 {dimension_numbers = #tpu.dot_dimension_numbers<[1], [0], [0], [1], [0, 0, 1, 1], [], []>, precision = #tpu.contract_precision<fp32>} : vector<8x4xf32>, vector<4x128xf32>, vector<8x128xf32> -> vector<8x128xf32>
    %6 = arith.addf %2, %5 : vector<8x128xf32>
    %c24 = arith.constant 24 : index
    %c0_7 = arith.constant 0 : index
    %7 = vector.load %arg2[%c24, %c0_7] : memref<320x128xf32, #tpu.memory_space<vmem>>, vector<1x128xf32>
    %8 = vector.broadcast %7 : vector<1x128xf32> to vector<8x128xf32>
    %9 = arith.addf %6, %8 : vector<8x128xf32>
    %cst_8 = arith.constant 0.000000e+00 : f32
    %10 = vector.broadcast %cst_8 : f32 to vector<8x128xf32>
    %11 = arith.maximumf %9, %10 : vector<8x128xf32>
    %c32 = arith.constant 32 : index
    %c0_9 = arith.constant 0 : index
    %12 = vector.load %arg2[%c32, %c0_9] : memref<320x128xf32, #tpu.memory_space<vmem>>, vector<128x128xf32>
    %cst_10 = arith.constant dense<0.000000e+00> : vector<8x128xf32>
    %13 = tpu.matmul %11, %12, %cst_10 {dimension_numbers = #tpu.dot_dimension_numbers<[1], [0], [0], [1], [0, 0, 1, 1], [], []>, precision = #tpu.contract_precision<fp32>} : vector<8x128xf32>, vector<128x128xf32>, vector<8x128xf32> -> vector<8x128xf32>
    %c160 = arith.constant 160 : index
    %c0_11 = arith.constant 0 : index
    %14 = vector.load %arg2[%c160, %c0_11] : memref<320x128xf32, #tpu.memory_space<vmem>>, vector<1x128xf32>
    %15 = vector.broadcast %14 : vector<1x128xf32> to vector<8x128xf32>
    %16 = arith.addf %13, %15 : vector<8x128xf32>
    %cst_12 = arith.constant 0.000000e+00 : f32
    %17 = vector.broadcast %cst_12 : f32 to vector<8x128xf32>
    %18 = arith.maximumf %16, %17 : vector<8x128xf32>
    %c168 = arith.constant 168 : index
    %c0_13 = arith.constant 0 : index
    %19 = vector.load %arg2[%c168, %c0_13] : memref<320x128xf32, #tpu.memory_space<vmem>>, vector<128x128xf32>
    %cst_14 = arith.constant dense<0.000000e+00> : vector<8x128xf32>
    %20 = tpu.matmul %18, %19, %cst_14 {dimension_numbers = #tpu.dot_dimension_numbers<[1], [0], [0], [1], [0, 0, 1, 1], [], []>, precision = #tpu.contract_precision<fp32>} : vector<8x128xf32>, vector<128x128xf32>, vector<8x128xf32> -> vector<8x128xf32>
    %c296 = arith.constant 296 : index
    %c0_15 = arith.constant 0 : index
    %21 = vector.load %arg2[%c296, %c0_15] : memref<320x128xf32, #tpu.memory_space<vmem>>, vector<1x128xf32>
    %22 = vector.broadcast %21 : vector<1x128xf32> to vector<8x128xf32>
    %23 = arith.addf %20, %22 : vector<8x128xf32>
    %cst_16 = arith.constant 0.000000e+00 : f32
    %24 = vector.broadcast %cst_16 : f32 to vector<8x128xf32>
    %25 = arith.maximumf %23, %24 : vector<8x128xf32>
    %c304 = arith.constant 304 : index
    %c0_17 = arith.constant 0 : index
    %26 = vector.load %arg2[%c304, %c0_17] : memref<320x128xf32, #tpu.memory_space<vmem>>, vector<1x128xf32>
    %c312 = arith.constant 312 : index
    %c0_18 = arith.constant 0 : index
    %27 = vector.load %arg2[%c312, %c0_18] : memref<320x128xf32, #tpu.memory_space<vmem>>, vector<1x1xf32>
    %28 = vector.broadcast %26 : vector<1x128xf32> to vector<8x128xf32>
    %29 = arith.mulf %25, %28 : vector<8x128xf32>
    %cst_19 = arith.constant dense<0.000000e+00> : vector<8xf32>
    %30 = vector.multi_reduction <add>, %29, %cst_19 [1] : vector<8x128xf32> to vector<8xf32>
    %31 = vector.shape_cast %30 : vector<8xf32> to vector<8x1xf32>
    %32 = vector.broadcast %27 : vector<1x1xf32> to vector<8x1xf32>
    %33 = arith.addf %31, %32 : vector<8x1xf32>
    %c0_20 = arith.constant 0 : index
    %c0_21 = arith.constant 0 : index
    %34 = vector.load %arg3[%c0_20, %c0_21] : memref<8x1xf32, #tpu.memory_space<vmem>>, vector<8x1xf32>
    tpu.vector_store %arg3[%c0_20, %c0_21], %33 {strides = array<i32>} : memref<8x1xf32, #tpu.memory_space<vmem>>, vector<8x1xf32>,
    return
  }
}

</mosaic_0001>

<bundles_post_ra>
// kernel: _lambda_.1
= control target key start
LH: loop header
LB: loop body
LE: loop exit
PB: predicated region body
PF: predicated region fallthrough
CT: control target
= control target key end

     0   :  { %8 = vsyncpa [#allocation3], 0  ;;  %s3393_s12 = smov [#allocation2]   ;;  %s4042_s0 = inlined_call_operand.vmem [shape: f32[8,16], index: 0, kind: input, shape index: {}]   ;;  %s4043_s1 = inlined_call_operand.vmem [shape: f32[8,4], index: 1, kind: input, shape index: {}]   ;;  %s4044_s2 = inlined_call_operand.hbm [shape: f32[320,128], index: 2, kind: input, shape index: {}]   ;;  %s4045_s3 = inlined_call_operand.vmem [shape: f32[8,1], index: 3, kind: output, shape index: {}]  }
   0x1   :  { %s18_s13 = sshll.u32 %s3393_s12, 4  ;;  %s3369_s16 = scalar_lea.hbm %s4044_s2, 5120  ;;  %s19_s13 = int_to_ptr.vmem [resolvable:$true] %s18_s13 }
   0x2   :  { %p3370_p0 = scmp.ne.s32.totalorder %s4044_s2, %s3369_s16  ;;  %p3373_p1 = scmp.lt.u32.totalorder %s3369_s16, %s4044_s2 }
   0x4   :  { %p3375_p2 = pnand %p3373_p1, %p3370_p0 }
   0x6   :  { %3378 = shalt.err (!%p3375_p2)
}
   0x7   :  { %s3379_s21 = scalar_lea.vmem %s19_s13, 5120  ;;  %p3384_p4 = scmp.lt.s32.totalorder %s19_s13, %s19_s13 }
   0x8   :  { %p3380_p3 = scmp.ne.s32.totalorder %s19_s13, %s3379_s21  ;;  %p3385_p5 = scmp.lt.s32.totalorder %s3379_s21, %s3379_s21 }
   0xa   :  { %p3386_p6 = por %p3385_p5, %p3384_p4 }
   0xc   :  { %p3387_p7 = pnand %p3386_p6, %p3380_p3 }
   0xe   :  { %3390 = shalt.err (!%p3387_p7)
}
   0xf   :  { %s3394_s22 = smov 128   ;;  %s3395_s23 = smov 8  }
  0x10   :  { %24 = dma.hbm_to_vmem [thread:$0]  %s4044_s2, 5120, %s19_s13, [#allocation3], %s3394_s22, %s3394_s22, %s3395_s23  }
  0x11   :  { %3391 = dma.done.wait [#allocation3], 5120  }
  0x12   :  { %3392 = vsyncadd [#allocation3], 4294962176  ;;  %v3396_v0 = vmov 0.0   ;;  %vm3397_vm0 = vmmov 0   ;;  %vm37_vm1 = vcmask 1043456   ;;  %vm33_vm2 = vcmask 31744  }
  0x13   :  { %2543 = vmatprep.subr.mxu0 %v3396_v0  ;;  %2545 = vmatprep.mubr.msk.f32.mxu0 %vm3397_vm0, %v3396_v0  ;;  %vm487_vm3 = vcmask 130048   ;;  %v32_v1 = vld [vmem:[#allocation2 + $0x10] sm:$0xf]  ;;  %v31_v2 = vld [vmem:[%s4043_s1] sm:$0xff]  ;;  %v30_v6 = vld [vmem:[#allocation2 + $0x8] sm:$0xff]  ;;  %v3398_v34 = vmov 0.0|0.0  }
  0x14   :  { %2548 = vmatprep.subr.mxu1 %v3396_v0  ;;  %2550 = vmatprep.mubr.msk.f32.mxu1 %vm3397_vm0, %v3396_v0  ;;  %v29_v3 = vld [vmem:[#allocation2] sm:$0xff]  ;;  %v39_v4 = vsel %vm37_vm1, %v32_v1, 0  ;;  %v35_v5 = vsel %vm33_vm2, %v31_v2, 0  ;;  %v495_v11 = vand.u32 4294901760, %v30_v6  ;;  %v958_v40 = vld [vmem:[#allocation2 + $0x28] sm:$0xff]  ;;  %v959_v46 = vld [vmem:[#allocation2 + $0x30] sm:$0xff] }
  0x15   :  { %v492_v7 = vand.u32 4294901760, %v29_v3  ;;  %v28_v8 = vld [vmem:[%s4042_s0] sm:$0xff]  ;;  %v42_v9 = vand.u32 4294901760, %v39_v4  ;;  %v107_v10 = vand.u32 4294901760, %v35_v5  ;;  %v982_v42 = vand.u32 4294901760, %v958_v40  ;;  %v960_v47 = vld [vmem:[#allocation2 + $0x38] sm:$0xff] }
  0x16   :  { %v489_v12 = vsel %vm487_vm3, %v28_v8, 0  ;;  %v577_v16 = vsub.f32 %v30_v6, %v495_v11  ;;  %v957_v39 = vld [vmem:[#allocation2 + $0x20] sm:$0xff]  ;;  %v985_v48 = vand.u32 4294901760, %v959_v46  ;;  %v988_v49 = vand.u32 4294901760, %v960_v47  ;;  %v962_v54 = vld [vmem:[#allocation2 + $0x48] sm:$0xff]  ;;  %v963_v60 = vld [vmem:[#allocation2 + $0x50] sm:$0xff] }
  0x17   :  { %v570_v13 = vsub.f32 %v29_v3, %v492_v7  ;;  %2544 = vmatpush3.msra.mxu0 %v42_v9  ;;  %v108_v14 = vsub.f32 %v35_v5, %v107_v10  ;;  %v119_v15 = vsub.f32 %v39_v4, %v42_v9  ;;  %v3443_v17 = vand.u32 4294901760, %v489_v12  ;;  %v961_v53 = vld [vmem:[#allocation2 + $0x40] sm:$0xff]  ;;  %v964_v61 = vld [vmem:[#allocation2 + $0x58] sm:$0xff]  ;;  %v966_v5 = vld [vmem:[#allocation2 + $0x68] sm:$0xff] }
  0x18   :  { %2553 = vmatprep.subr.mxu0 %v3396_v0  ;;  %v578_v21 = vand.u32 4294901760, %v577_v16  ;;  %v3036_v33 = vpack.c.bf16 %v495_v11, %v492_v7  ;;  %v979_v41 = vand.u32 4294901760, %v957_v39  ;;  %v3489_v45 = vsub.f32 %v958_v40, %v982_v42  ;;  %v965_v4 = vld [vmem:[#allocation2 + $0x60] sm:$0xff] }
  0x19   :  { %v109_v18 = vand.u32 4294901760, %v108_v14  ;;  %v120_v19 = vand.u32 4294901760, %v119_v15  ;;  %v571_v20 = vand.u32 4294901760, %v570_v13  ;;  %v559_v24 = vsub.f32 %v489_v12, %v3443_v17 }
  0x1a   :  { %v579_v28 = vsub.f32 %v577_v16, %v578_v21  ;;  %v3042_v37 = vpack.c.bf16 %v577_v16, %v570_v13  ;;  %v3485_v43 = vpack.c.bf16 %v982_v42, %v979_v41  ;;  %v3487_v44 = vsub.f32 %v957_v39, %v979_v41 }
  0x1b   :  { %v110_v22 = vsub.f32 %v108_v14, %v109_v18  ;;  %v121_v23 = vsub.f32 %v119_v15, %v120_v19  ;;  %v572_v27 = vsub.f32 %v570_v13, %v571_v20  ;;  %v560_v29 = vand.u32 4294901760, %v559_v24 }
  0x1c   :  { %v580_v31 = vand.u32 4294901760, %v579_v28  ;;  %v3048_v38 = vpack.c.bf16 %v578_v21, %v571_v20  ;;  %v3493_v50 = vpack.c.bf16 %v988_v49, %v985_v48  ;;  %v3495_v51 = vsub.f32 %v959_v46, %v985_v48  ;;  %v972_v20 = vld [vmem:[#allocation2 + $0x98] sm:$0xff] }
  0x1d   :  { %v111_v25 = vand.u32 4294901760, %v110_v22  ;;  %v122_v26 = vand.u32 4294901760, %v121_v23  ;;  %v573_v30 = vand.u32 4294901760, %v572_v27  ;;  %v561_v32 = vsub.f32 %v559_v24, %v560_v29 }
  0x1e   :  { %v3497_v52 = vsub.f32 %v960_v47, %v988_v49  ;;  %v991_v55 = vand.u32 4294901760, %v961_v53  ;;  %v994_v56 = vand.u32 4294901760, %v962_v54  ;;  %v997_v62 = vand.u32 4294901760, %v963_v60 }
  0x1f   :  { %2546 = vmatmul.mubr.f32.vlgmr.msra.gmra.mrb[0].mxu0 %v111_v25  ;;  %2549 = vmatpush3.msra.mxu1 %v122_v26  ;;  %v3039_v35 = vpack.c.bf16 %v580_v31, %v573_v30  ;;  %v562_v36 = vand.u32 4294901760, %v561_v32  ;;  %v1000_v63 = vand.u32 4294901760, %v964_v61  ;;  %v1003_v6 = vand.u32 4294901760, %v965_v4 }
  0x20   :  { %2554 = vmatpush3.msra.mxu0 %v119_v15  ;;  %2551 = vmatmul.mubr.f32.vlgmr.msra.gmra.mrb[0].mxu1 %v107_v10  ;;  %v3501_v57 = vpack.c.bf16 %v994_v56, %v991_v55  ;;  %v3503_v58 = vsub.f32 %v961_v53, %v991_v55  ;;  %v3505_v59 = vsub.f32 %v962_v54, %v994_v56  ;;  %v1006_v7 = vand.u32 4294901760, %v966_v5  ;;  %v970_v15 = vld [vmem:[#allocation2 + $0x88] sm:$0xff] }
  0x21   :  { %2558 = vmatprep.subr.mxu1 %v3396_v0  ;;  %2555 = vmatprep.mubr.msk.f32.mxu0 %vm3397_vm0, %v3396_v0  ;;  %v3509_v1 = vpack.c.bf16 %v1000_v63, %v997_v62  ;;  %v3511_v2 = vsub.f32 %v963_v60, %v997_v62  ;;  %v3513_v3 = vsub.f32 %v964_v61, %v1000_v63  ;;  %v1024_v22 = vand.u32 4294901760, %v972_v20 }
  0x22   :  { %2559 = vmatpush3.msra.mxu1 %v42_v9  ;;  %2563 = vmatprep.subr.mxu0 %v3396_v0  ;;  %v3517_v8 = vpack.c.bf16 %v1006_v7, %v1003_v6  ;;  %v4061_v23 = vand.u32 4294901760, %v3487_v44  ;;  %v3530_v25 = vsub.f32 %v965_v4, %v1003_v6  ;;  %v3532_v26 = vsub.f32 %v966_v5, %v1006_v7 }
  0x23   :  { %2556 = vmatmul.mubr.f32.vlgmr.msra.gmra.mrb[2].mxu0 %v108_v14  ;;  %2560 = vmatprep.mubr.msk.f32.mxu1 %vm3397_vm0, %v3396_v0  ;;  %v969_v14 = vld [vmem:[#allocation2 + $0x80] sm:$0xff]  ;;  %v4057_v49 = vand.u32 4294901760, %v3503_v58  ;;  %v4056_v53 = vand.u32 4294901760, %v3505_v59  ;;  %v4055_v62 = vand.u32 4294901760, %v3511_v2  ;;  %v4054_v63 = vand.u32 4294901760, %v3513_v3 }
  0x24   :  { %2564 = vmatpush3.msra.mxu0 %v120_v19  ;;  %2561 = vmatmul.mubr.f32.vlgmr.msra.gmra.mrb[2].mxu1 %v109_v18  ;;  %v1015_v16 = vand.u32 4294901760, %v969_v14  ;;  %v971_v19 = vld [vmem:[#allocation2 + $0x90] sm:$0xff]  ;;  %vm2297_vm4 = vcmask 7168  }
  0x25   :  { %2568 = vmatprep.subr.mxu1 %v3396_v0  ;;  %2565 = vmatprep.mubr.msk.f32.mxu0 %vm3397_vm0, %v3396_v0  ;;  %v1021_v21 = vand.u32 4294901760, %v971_v19  ;;  %v1101_v55 = vsub.f32 %v3503_v58, %v4057_v49  ;;  %v1108_v56 = vsub.f32 %v3505_v59, %v4056_v53  ;;  %v1115_v5 = vsub.f32 %v3511_v2, %v4055_v62 }
  0x26   :  { %2569 = vmatpush3.msra.mxu1 %v42_v9  ;;  %3035 = vmatprep.subr.bf16.mxu0 %v3398_v34  ;;  %v967_v9 = vld [vmem:[#allocation2 + $0x70] sm:$0xff]  ;;  %v1122_v6 = vsub.f32 %v3513_v3, %v4054_v63 }
  0x27   :  { %2566 = vmatmul.mubr.f32.vlgmr.msra.gmra.mrb[4].mxu0 %v107_v10  ;;  %2570 = vmatprep.mubr.msk.f32.mxu1 %vm3397_vm0, %v3396_v0  ;;  %v1009_v11 = vand.u32 4294901760, %v967_v9  ;;  %v3543_v31 = vpack.c.bf16 %v1024_v22, %v1021_v21  ;;  %v3545_v32 = vsub.f32 %v971_v19, %v1021_v21  ;;  %v1102_v60 = vand.u32 4294901760, %v1101_v55 }
  0x28   :  { %3037 = vmatpush3.bf16.msra.mxu0 %v3036_v33  ;;  %2571 = vmatmul.mubr.f32.vlgmr.msra.gmra.mrb[4].mxu1 %v107_v10  ;;  %v968_v10 = vld [vmem:[#allocation2 + $0x78] sm:$0xff]  ;;  %v1109_v61 = vand.u32 4294901760, %v1108_v56  ;;  %v1116_v7 = vand.u32 4294901760, %v1115_v5 }
  0x29   :  { %3038 = vmatprep.subr.bf16.mxu1 %v3398_v34  ;;  %2577 = vmatprep.mubr.msk.f32.mxu0 %vm3397_vm0, %v3396_v0  ;;  %v1012_v12 = vand.u32 4294901760, %v968_v10  ;;  %v3534_v27 = vsub.f32 %v967_v9, %v1009_v11  ;;  %v1123_v9 = vand.u32 4294901760, %v1122_v6 }
  0x2a   :  { %3040 = vmatpush3.bf16.msra.mxu1 %v3039_v35  ;;  %3041 = vmatprep.subr.bf16.mxu0 %v3398_v34  ;;  %v1073_v35 = vsub.f32 %v3487_v44, %v4061_v23  ;;  %v3579_v4 = vpack.c.bf16 %v1109_v61, %v1102_v60  ;;  %v4047_v60 = vand.u32 4294901760, %v3545_v32 }
  0x2b   :  { %2578 = vmatmul.mubr.f32.vlgmr.msra.gmra.mrb[6].mxu0 %v562_v36  ;;  %2584 = vmatprep.mubr.msk.f32.mxu1 %vm3397_vm0, %v3396_v0  ;;  %v3521_v13 = vpack.c.bf16 %v1012_v12, %v1009_v11  ;;  %v3536_v28 = vsub.f32 %v968_v10, %v1012_v12  ;;  %v4053_v10 = vand.u32 4294901760, %v3530_v25  ;;  %v4052_v11 = vand.u32 4294901760, %v3532_v26 }
  0x2c   :  { %3043 = vmatpush3.bf16.msra.mxu0 %v3042_v37  ;;  %3044 = vmatprep.subr.bf16.mxu1 %v3398_v34  ;;  %v4059_v37 = vand.u32 4294901760, %v3495_v51  ;;  %v1074_v39 = vand.u32 4294901760, %v1073_v35  ;;  %v3589_v12 = vpack.c.bf16 %v1123_v9, %v1116_v7  ;;  %v4051_v19 = vand.u32 4294901760, %v3534_v27 }
  0x2d   :  { %2585 = vmatmul.mubr.f32.vlgmr.msra.gmra.mrb[6].mxu1 %v3443_v17  ;;  %2591 = vmatprep.mubr.msk.f32.mxu0 %vm3397_vm0, %v3396_v0  ;;  %v1171_v6 = vsub.f32 %v3545_v32, %v4047_v60 }
  0x2e   :  { %3046 = vmatpush3.bf16.msra.mxu1 %v3036_v33  ;;  %3047 = vmatprep.subr.bf16.mxu0 %v3398_v34  ;;  %v1087_v41 = vsub.f32 %v3495_v51, %v4059_v37 }
  0x2f   :  { %2592 = vmatmul.mubr.f32.vlgmr.msra.gmra.mrb[8].mxu0 %v559_v24  ;;  %2598 = vmatprep.mubr.msk.f32.mxu1 %vm3397_vm0, %v3396_v0  ;;  %v4060_v24 = vand.u32 4294901760, %v3489_v45  ;;  %v1172_v9 = vand.u32 4294901760, %v1171_v6 }
  0x30   :  { %3049 = vmatpush3.bf16.msra.mxu0 %v3048_v38  ;;  %3050 = vmatprep.subr.bf16.mxu1 %v3398_v34  ;;  %v4058_v38 = vand.u32 4294901760, %v3497_v52  ;;  %v1088_v47 = vand.u32 4294901760, %v1087_v41 }
  0x31   :  { %2599 = vmatmul.mubr.f32.vlgmr.msra.gmra.mrb[8].mxu1 %v560_v29  ;;  %2605 = vmatprep.mubr.msk.f32.mxu0 %vm3397_vm0, %v3396_v0  ;;  %v3539_v29 = vsub.f32 %v969_v14, %v1015_v16  ;;  %v1080_v36 = vsub.f32 %v3489_v45, %v4060_v24  ;;  %v1129_v14 = vsub.f32 %v3530_v25, %v4053_v10 }
  0x32   :  { %3052 = vmatpush3.bf16.msra.mxu1 %v3036_v33  ;;  %2612 = vmatprep.mubr.msk.f32.mxu1 %vm3397_vm0, %v3396_v0  ;;  %v3547_v33 = vsub.f32 %v972_v20, %v1024_v22  ;;  %v1094_v42 = vsub.f32 %v3497_v52, %v4058_v38  ;;  %v4050_v20 = vand.u32 4294901760, %v3536_v28  ;;  %v1143_v22 = vsub.f32 %v3534_v27, %v4051_v19 }
  0x33   :  { %2606 = vmatmul.mubr.f32.vlgmr.msra.gmra.mrb[10].mxu0 %v3443_v17  ;;  %3053 = vmatprep.subr.bf16.mxu0 %v3398_v34  ;;  %v1081_v40 = vand.u32 4294901760, %v1080_v36 }
  0x34   :  { %2647 = vmatprep.mubr.msk.f32.mxu0 %vm3397_vm0, %v3396_v0  ;;  %3197 = vmatprep.subr.bf16.mxu1 %v3398_v34  ;;  %v1095_v48 = vand.u32 4294901760, %v1094_v42  ;;  %v1150_v35 = vsub.f32 %v3536_v28, %v4050_v20  ;;  %v1144_v36 = vand.u32 4294901760, %v1143_v22  ;;  %v4046_v61 = vand.u32 4294901760, %v3547_v33 }
  0x35   :  { %2613 = vmatmul.mubr.f32.vlgmr.msra.gmra.mrb[10].mxu1 %v3443_v17  ;;  %3055 = vmatpush3.bf16.msra.mxu0 %v3485_v43  ;;  %v1018_v17 = vand.u32 4294901760, %v970_v15  ;;  %v3565_v46 = vpack.c.bf16 %v1081_v40, %v1074_v39  ;;  %v4049_v40 = vand.u32 4294901760, %v3539_v29  ;;  %v3108_v22 = vpack.c.bf16 %v3505_v59, %v3503_v58 }
  0x36   :  { %2857 = vmatprep.mubr.msk.f32.mxu1 %vm3397_vm0, %v3396_v0  ;;  %3056 = vmatprep.subr.bf16.mxu0 %v3398_v34  ;;  %v3569_v54 = vpack.c.bf16 %v1095_v48, %v1088_v47  ;;  %v1151_v39 = vand.u32 4294901760, %v1150_v35  ;;  %v1178_v7 = vsub.f32 %v3547_v33, %v4046_v61  ;;  %v3111_v35 = vpack.c.bf16 %v3513_v3, %v3511_v2 }
  0x37   :  { %v3525_v18 = vpack.c.bf16 %v1018_v17, %v1015_v16  ;;  %v3541_v30 = vsub.f32 %v970_v15, %v1018_v17  ;;  %v1136_v15 = vsub.f32 %v3532_v26, %v4052_v11  ;;  %v1130_v16 = vand.u32 4294901760, %v1129_v14 }
  0x38   :  { %v3609_v42 = vpack.c.bf16 %v1151_v39, %v1144_v36  ;;  %v1157_v47 = vsub.f32 %v3539_v29, %v4049_v40  ;;  %v1179_v14 = vand.u32 4294901760, %v1178_v7  ;;  %v3114_v36 = vpack.c.bf16 %v3532_v26, %v3530_v25 }
  0x39   :  { %3058 = vmatpush3.bf16.msra.mxu0 %v3493_v50  ;;  %v1137_v17 = vand.u32 4294901760, %v1136_v15  ;;  %v4048_v41 = vand.u32 4294901760, %v3541_v30  ;;  %v3117_v39 = vpack.c.bf16 %v3536_v28, %v3534_v27 }
  0x3a   :  { %3059 = vmatprep.subr.bf16.mxu0 %v3398_v34  ;;  %v1158_v55 = vand.u32 4294901760, %v1157_v47  ;;  %v3627_v15 = vpack.c.bf16 %v1179_v14, %v1172_v9  ;;  %v3120_v47 = vpack.c.bf16 %v3541_v30, %v3539_v29 }
  0x3b   :  { %v3599_v21 = vpack.c.bf16 %v1137_v17, %v1130_v16  ;;  %v1164_v48 = vsub.f32 %v3541_v30, %v4048_v41  ;;  %v3102_v16 = vpack.c.bf16 %v3489_v45, %v3487_v44  ;;  %v3105_v17 = vpack.c.bf16 %v3497_v52, %v3495_v51 }
  0x3d   :  { %3061 = vmatpush3.bf16.msra.mxu0 %v3501_v57  ;;  %v1165_v56 = vand.u32 4294901760, %v1164_v48  ;;  %v3123_v48 = vpack.c.bf16 %v3547_v33, %v3545_v32 }
  0x3e   :  { %3062 = vmatprep.subr.bf16.mxu0 %v3398_v34 }
  0x3f   :  { %v3619_v5 = vpack.c.bf16 %v1165_v56, %v1158_v55 }
  0x41   :  { %3064 = vmatpush3.bf16.msra.mxu0 %v3509_v1 }
  0x42   :  { %3065 = vmatprep.subr.bf16.mxu0 %v3398_v34 }
  0x45   :  { %3067 = vmatpush3.bf16.msra.mxu0 %v3517_v8 }
  0x46   :  { %3068 = vmatprep.subr.bf16.mxu0 %v3398_v34 }
  0x49   :  { %3070 = vmatpush3.bf16.msra.mxu0 %v3521_v13 }
  0x4a   :  { %3071 = vmatprep.subr.bf16.mxu0 %v3398_v34 }
  0x4d   :  { %3073 = vmatpush3.bf16.msra.mxu0 %v3525_v18 }
  0x4e   :  { %3074 = vmatprep.subr.bf16.mxu0 %v3398_v34 }
  0x51   :  { %3076 = vmatpush3.bf16.msra.mxu0 %v3543_v31 }
  0x52   :  { %3077 = vmatprep.subr.bf16.mxu0 %v3398_v34 }
  0xf2   :  { %v113_v55 = vpop.f32.mrb[0].mxu0 }
  0xf3   :  { %v2547_v56 = vpop.f32.mrb[1].mxu0  ;;  %v189_v6 = vpop.f32.mrb[0].mxu1 }
  0xf4   :  { %v190_v7 = vadd.f32 %v189_v6, %v113_v55  ;;  %v2552_v9 = vpop.f32.mrb[1].mxu1 }
  0xf6   :  { %v263_v14 = vpop.f32.mrb[2].mxu0 }
  0xf7   :  { %v264_v61 = vadd.f32 %v263_v14, %v190_v7  ;;  %v2557_v60 = vpop.f32.mrb[3].mxu0  ;;  %v337_v41 = vpop.f32.mrb[2].mxu1 }
  0xf8   :  { %v2562_v40 = vpop.f32.mrb[3].mxu1 }
  0xf9   :  { %v338_v20 = vadd.f32 %v337_v41, %v264_v61 }
  0xfa   :  { %v411_v19 = vpop.f32.mrb[4].mxu0 }
  0xfb   :  { %v412_v11 = vadd.f32 %v411_v19, %v338_v20  ;;  %v2567_v10 = vpop.f32.mrb[5].mxu0  ;;  %v483_v63 = vpop.f32.mrb[4].mxu1 }
  0xfc   :  { %v2572_v62 = vpop.f32.mrb[5].mxu1  ;;  %v2304_v10 = vld [vmem:[#allocation2 + $0x18] ss:$0 sm:$0xff] }
  0xfd   :  { %v484_v53 = vadd.f32 %v483_v63, %v412_v11 }
  0xfe   :  { %v564_v49 = vpop.f32.mrb[6].mxu0 }
  0xff   :  { %v565_v38 = vadd.f32 %v564_v49, %v484_v53  ;;  %v2579_v37 = vpop.f32.mrb[7].mxu0  ;;  %v1621_v53 = vld [vmem:[#allocation2 + $0xb0] sm:$0xff] }
 0x100   :  { %v645_v24 = vpop.f32.mrb[6].mxu1 }
 0x101   :  { %v646_v56 = vadd.f32 %v645_v24, %v565_v38  ;;  %v2586_v23 = vpop.f32.mrb[7].mxu1 }
 0x102   :  { %v721_v55 = vpop.f32.mrb[8].mxu0 }
 0x103   :  { %v722_v6 = vadd.f32 %v721_v55, %v646_v56  ;;  %v2593_v9 = vpop.f32.mrb[9].mxu0 }
 0x104   :  { %v796_v7 = vpop.f32.mrb[8].mxu1  ;;  %v1626_v9 = vld [vmem:[#allocation2 + $0xd8] sm:$0xff] }
 0x105   :  { %v797_v60 = vadd.f32 %v796_v7, %v722_v6  ;;  %v2600_v14 = vpop.f32.mrb[9].mxu1  ;;  %v1627_v7 = vld [vmem:[#allocation2 + $0xe0] sm:$0xff] }
 0x106   :  { %v873_v40 = vpop.f32.mrb[10].mxu0 }
 0x107   :  { %v874_v41 = vadd.f32 %v873_v40, %v797_v60  ;;  %v2607_v61 = vpop.f32.mrb[11].mxu0  ;;  %v1628_v60 = vld [vmem:[#allocation2 + $0xe8] sm:$0xff] }
 0x108   :  { %v946_v19 = vpop.f32.mrb[10].mxu1  ;;  %v1629_v61 = vld [vmem:[#allocation2 + $0xf0] sm:$0xff] }
 0x109   :  { %v947_v20 = vadd.f32 %v946_v19, %v874_v41  ;;  %v2614_v62 = vpop.f32.mrb[11].mxu1 }
 0x10b   :  { %v955_v63 = vadd.f32 %v2304_v10, %v947_v20 }
 0x10d   :  { %v956_v11 = vmax.f32 %v955_v63, 0.0  ;;  %v1660_v63 = vand.u32 4294901760, %v1626_v9 }
 0x10f   :  { %v3645_v49 = vand.u32 4294901760, %v956_v11 }
 0x111   :  { %v3648_v24 = vsub.f32 %v956_v11, %v3645_v49  ;;  %v1663_v11 = vand.u32 4294901760, %v1627_v7 }
 0x113   :  { %v1061_v23 = vand.u32 4294901760, %v3648_v24 }
 0x115   :  { %v1062_v37 = vsub.f32 %v3648_v24, %v1061_v23 }
 0x117   :  { %v1063_v38 = vand.u32 4294901760, %v1062_v37  ;;  %v1666_v37 = vand.u32 4294901760, %v1628_v60 }
 0x119   :  { %2648 = vmatmul.mubr.f32.vlgmr.msra.gmra.mrb[12].mxu0 %v1063_v38  ;;  %v1669_v38 = vand.u32 4294901760, %v1629_v61 }
 0x11a   :  { %3079 = vmatpush3.bf16.msra.mxu0 %v3565_v46  ;;  %2682 = vmatprep.mubr.msk.f32.mxu0 %vm3397_vm0, %v3396_v0  ;;  %v1620_v46 = vld [vmem:[#allocation2 + $0xa8] sm:$0xff] }
 0x11b   :  { %3080 = vmatprep.subr.bf16.mxu0 %v3398_v34 }
 0x11e   :  { %3082 = vmatpush3.bf16.msra.mxu0 %v3569_v54  ;;  %v1622_v54 = vld [vmem:[#allocation2 + $0xb8] sm:$0xff] }
 0x11f   :  { %3083 = vmatprep.subr.bf16.mxu0 %v3398_v34 }
 0x122   :  { %3085 = vmatpush3.bf16.msra.mxu0 %v3579_v4  ;;  %v1642_v4 = vand.u32 4294901760, %v1620_v46 }
 0x123   :  { %3086 = vmatprep.subr.bf16.mxu0 %v3398_v34 }
 0x126   :  { %3088 = vmatpush3.bf16.msra.mxu0 %v3589_v12  ;;  %v1645_v12 = vand.u32 4294901760, %v1621_v53 }
 0x127   :  { %3089 = vmatprep.subr.bf16.mxu0 %v3398_v34 }
 0x128   :  { %v3679_v14 = vpack.c.bf16 %v1645_v12, %v1642_v4  ;;  %v3683_v40 = vsub.f32 %v1621_v53, %v1645_v12  ;;  %v3703_v53 = vsub.f32 %v1627_v7, %v1663_v11  ;;  %v3721_v12 = vpack.c.bf16 %v1663_v11, %v1660_v63 }
 0x12a   :  { %3091 = vmatpush3.bf16.msra.mxu0 %v3599_v21  ;;  %v1623_v21 = vld [vmem:[#allocation2 + $0xc0] sm:$0xff]  ;;  %3199 = vmatpush3.bf16.msra.mxu1 %v3679_v14 }
 0x12b   :  { %3092 = vmatprep.subr.bf16.mxu0 %v3398_v34  ;;  %v1651_v56 = vand.u32 4294901760, %v1623_v21  ;;  %3200 = vmatprep.subr.bf16.mxu1 %v3398_v34 }
 0x12d   :  { %v3689_v10 = vsub.f32 %v1623_v21, %v1651_v56 }
 0x12e   :  { %3094 = vmatpush3.bf16.msra.mxu0 %v3609_v42  ;;  %v1648_v42 = vand.u32 4294901760, %v1622_v54 }
 0x12f   :  { %3095 = vmatprep.subr.bf16.mxu0 %v3398_v34 }
 0x130   :  { %v3685_v41 = vsub.f32 %v1622_v54, %v1648_v42  ;;  %v3687_v19 = vpack.c.bf16 %v1651_v56, %v1648_v42  ;;  %v3705_v54 = vsub.f32 %v1628_v60, %v1666_v37 }
 0x132   :  { %3097 = vmatpush3.bf16.msra.mxu0 %v3619_v5  ;;  %v1624_v5 = vld [vmem:[#allocation2 + $0xc8] sm:$0xff]  ;;  %3202 = vmatpush3.bf16.msra.mxu1 %v3687_v19 }
 0x133   :  { %3098 = vmatprep.subr.bf16.mxu0 %v3398_v34  ;;  %v1654_v55 = vand.u32 4294901760, %v1624_v5  ;;  %3203 = vmatprep.subr.bf16.mxu1 %v3398_v34 }
 0x135   :  { %v3691_v20 = vsub.f32 %v1624_v5, %v1654_v55  ;;  %v4075_v5 = vand.u32 4294901760, %v3532_v26  ;;  %v4081_v26 = vand.u32 4294901760, %v3547_v33 }
 0x136   :  { %3100 = vmatpush3.bf16.msra.mxu0 %v3627_v15  ;;  %v1625_v15 = vld [vmem:[#allocation2 + $0xd0] sm:$0xff] }
 0x137   :  { %3101 = vmatprep.subr.bf16.mxu0 %v3398_v34  ;;  %v1657_v6 = vand.u32 4294901760, %v1625_v15 }
 0x139   :  { %2683 = vmatmul.mubr.f32.vlgmr.msra.gmra.mrb[12].mxu0 %v3645_v49  ;;  %v3697_v62 = vsub.f32 %v1625_v15, %v1657_v6 }
 0x13a   :  { %3103 = vmatpush3.bf16.msra.mxu0 %v3102_v16  ;;  %2717 = vmatprep.mubr.msk.f32.mxu0 %vm3397_vm0, %v3396_v0  ;;  %v3681_v16 = vsub.f32 %v1620_v46, %v1642_v4  ;;  %v3701_v46 = vsub.f32 %v1626_v9, %v1660_v63  ;;  %v3707_v4 = vsub.f32 %v1629_v61, %v1669_v38  ;;  %v1742_v9 = vand.u32 4294901760, %v3683_v40 }
 0x13b   :  { %3104 = vmatprep.subr.bf16.mxu0 %v3398_v34 }
 0x13c   :  { %v1743_v61 = vsub.f32 %v3683_v40, %v1742_v9 }
 0x13e   :  { %3106 = vmatpush3.bf16.msra.mxu0 %v3105_v17  ;;  %v3713_v17 = vpack.c.bf16 %v1657_v6, %v1654_v55 }
 0x13f   :  { %3107 = vmatprep.subr.bf16.mxu0 %v3398_v34 }
 0x140   :  { %3205 = vmatpush3.bf16.msra.mxu1 %v3713_v17 }
 0x141   :  { %3206 = vmatprep.subr.bf16.mxu1 %v3398_v34 }
 0x142   :  { %3109 = vmatpush3.bf16.msra.mxu0 %v3108_v22  ;;  %v3729_v22 = vpack.c.bf16 %v1669_v38, %v1666_v37 }
 0x143   :  { %3110 = vmatprep.subr.bf16.mxu0 %v3398_v34 }
 0x144   :  { %3208 = vmatpush3.bf16.msra.mxu1 %v3721_v12 }
 0x145   :  { %3209 = vmatprep.subr.bf16.mxu1 %v3398_v34 }
 0x146   :  { %3112 = vmatpush3.bf16.msra.mxu0 %v3111_v35  ;;  %v4066_v35 = vand.u32 4294901760, %v3487_v44  ;;  %v4070_v44 = vand.u32 4294901760, %v3503_v58  ;;  %v4076_v58 = vand.u32 4294901760, %v3534_v27 }
 0x147   :  { %3113 = vmatprep.subr.bf16.mxu0 %v3398_v34 }
 0x148   :  { %3211 = vmatpush3.bf16.msra.mxu1 %v3729_v22 }
 0x149   :  { %3212 = vmatprep.subr.bf16.mxu1 %v3398_v34 }
 0x14a   :  { %3115 = vmatpush3.bf16.msra.mxu0 %v3114_v36  ;;  %v4067_v36 = vand.u32 4294901760, %v3489_v45  ;;  %v4071_v45 = vand.u32 4294901760, %v3505_v59  ;;  %v4077_v59 = vand.u32 4294901760, %v3536_v28  ;;  %v1633_v28 = vld [vmem:[#allocation2 + $0x110] sm:$0xff] }
 0x14b   :  { %3116 = vmatprep.subr.bf16.mxu0 %v3398_v34 }
 0x14c   :  { %v3156_v42 = vpack.c.bf16 %v4071_v45, %v4070_v44  ;;  %v3165_v56 = vpack.c.bf16 %v4077_v59, %v4076_v58 }
 0x14e   :  { %3118 = vmatpush3.bf16.msra.mxu0 %v3117_v39  ;;  %v3150_v39 = vpack.c.bf16 %v4067_v36, %v4066_v35 }
 0x14f   :  { %3119 = vmatprep.subr.bf16.mxu0 %v3398_v34 }
 0x152   :  { %3121 = vmatpush3.bf16.msra.mxu0 %v3120_v47  ;;  %v4068_v47 = vand.u32 4294901760, %v3495_v51  ;;  %v4073_v51 = vand.u32 4294901760, %v3513_v3  ;;  %v4079_v3 = vand.u32 4294901760, %v3541_v30  ;;  %v1634_v30 = vld [vmem:[#allocation2 + $0x118] sm:$0xff] }
 0x153   :  { %3122 = vmatprep.subr.bf16.mxu0 %v3398_v34 }
 0x156   :  { %3124 = vmatpush3.bf16.msra.mxu0 %v3123_v48  ;;  %v4069_v48 = vand.u32 4294901760, %v3497_v52 }
 0x157   :  { %3125 = vmatprep.subr.bf16.mxu0 %v3398_v34 }
 0x158   :  { %v3153_v21 = vpack.c.bf16 %v4069_v48, %v4068_v47  ;;  %v1744_v47 = vand.u32 4294901760, %v1743_v61  ;;  %v1749_v48 = vand.u32 4294901760, %v3685_v41 }
 0x159   :  { %2718 = vmatmul.mubr.f32.vlgmr.msra.gmra.mrb[12].mxu0 %v3648_v24  ;;  %v4072_v24 = vand.u32 4294901760, %v3511_v2  ;;  %v4078_v2 = vand.u32 4294901760, %v3539_v29  ;;  %v1681_v29 = vand.u32 4294901760, %v1633_v28 }
 0x15a   :  { %3127 = vmatpush3.bf16.msra.mxu0 %v3485_v43  ;;  %2752 = vmatprep.mubr.msk.f32.mxu0 %vm3397_vm0, %v3396_v0  ;;  %v1750_v45 = vsub.f32 %v3685_v41, %v1749_v48 }
 0x15b   :  { %3128 = vmatprep.subr.bf16.mxu0 %v3398_v34  ;;  %v3159_v52 = vpack.c.bf16 %v4073_v51, %v4072_v24  ;;  %v3168_v55 = vpack.c.bf16 %v4079_v3, %v4078_v2  ;;  %v3853_v38 = vsub.f32 %v1633_v28, %v1681_v29  ;;  %v1763_v24 = vand.u32 4294901760, %v3691_v20 }
 0x15c   :  { %v1770_v51 = vand.u32 4294901760, %v3697_v62  ;;  %v1777_v2 = vand.u32 4294901760, %v3701_v46  ;;  %v1784_v3 = vand.u32 4294901760, %v3703_v53 }
 0x15e   :  { %3130 = vmatpush3.bf16.msra.mxu0 %v3493_v50 }
 0x15f   :  { %3131 = vmatprep.subr.bf16.mxu0 %v3398_v34 }
 0x162   :  { %3133 = vmatpush3.bf16.msra.mxu0 %v3501_v57 }
 0x163   :  { %3134 = vmatprep.subr.bf16.mxu0 %v3398_v34 }
 0x166   :  { %3136 = vmatpush3.bf16.msra.mxu0 %v3509_v1 }
 0x167   :  { %3137 = vmatprep.subr.bf16.mxu0 %v3398_v34 }
 0x16a   :  { %3139 = vmatpush3.bf16.msra.mxu0 %v3517_v8 }
 0x16b   :  { %3140 = vmatprep.subr.bf16.mxu0 %v3398_v34 }
 0x16e   :  { %3142 = vmatpush3.bf16.msra.mxu0 %v3521_v13 }
 0x16f   :  { %3143 = vmatprep.subr.bf16.mxu0 %v3398_v34 }
 0x172   :  { %3145 = vmatpush3.bf16.msra.mxu0 %v3525_v18 }
 0x173   :  { %3146 = vmatprep.subr.bf16.mxu0 %v3398_v34 }
 0x176   :  { %3148 = vmatpush3.bf16.msra.mxu0 %v3543_v31 }
 0x177   :  { %3149 = vmatprep.subr.bf16.mxu0 %v3398_v34 }
 0x179   :  { %2753 = vmatmul.mubr.f32.vlgmr.msra.gmra.mrb[12].mxu0 %v1061_v23  ;;  %v4074_v23 = vand.u32 4294901760, %v3530_v25  ;;  %v4080_v25 = vand.u32 4294901760, %v3545_v32  ;;  %v1684_v32 = vand.u32 4294901760, %v1634_v30 }
 0x17a   :  { %3151 = vmatpush3.bf16.msra.mxu0 %v3150_v39  ;;  %2787 = vmatprep.mubr.msk.f32.mxu0 %vm3397_vm0, %v3396_v0 }
 0x17b   :  { %3152 = vmatprep.subr.bf16.mxu0 %v3398_v34  ;;  %v3162_v15 = vpack.c.bf16 %v4075_v5, %v4074_v23  ;;  %v3171_v6 = vpack.c.bf16 %v4081_v26, %v4080_v25  ;;  %v3856_v35 = vsub.f32 %v1634_v30, %v1684_v32  ;;  %v1764_v5 = vsub.f32 %v3691_v20, %v1763_v24 }
 0x17c   :  { %v1778_v25 = vsub.f32 %v3701_v46, %v1777_v2  ;;  %v1785_v26 = vsub.f32 %v3703_v53, %v1784_v3 }
 0x17d   :  { %v1765_v59 = vand.u32 4294901760, %v1764_v5 }
 0x17e   :  { %3154 = vmatpush3.bf16.msra.mxu0 %v3153_v21  ;;  %v1756_v21 = vand.u32 4294901760, %v3689_v10 }
 0x17f   :  { %3155 = vmatprep.subr.bf16.mxu0 %v3398_v34 }
 0x182   :  { %3157 = vmatpush3.bf16.msra.mxu0 %v3156_v42  ;;  %v1757_v42 = vsub.f32 %v3689_v10, %v1756_v21 }
 0x183   :  { %3158 = vmatprep.subr.bf16.mxu0 %v3398_v34 }
 0x184   :  { %v1758_v23 = vand.u32 4294901760, %v1757_v42 }
 0x186   :  { %3160 = vmatpush3.bf16.msra.mxu0 %v3159_v52  ;;  %v1751_v52 = vand.u32 4294901760, %v1750_v45  ;;  %v4064_v45 = vand.u32 4294901760, %v3853_v38 }
 0x187   :  { %3161 = vmatprep.subr.bf16.mxu0 %v3398_v34 }
 0x188   :  { %v3225_v58 = vpack.c.bf16 %v1758_v23, %v1751_v52  ;;  %v1827_v23 = vsub.f32 %v3853_v38, %v4064_v45 }
 0x18a   :  { %3163 = vmatpush3.bf16.msra.mxu0 %v3162_v15  ;;  %v1771_v15 = vsub.f32 %v3697_v62, %v1770_v51 }
 0x18b   :  { %3164 = vmatprep.subr.bf16.mxu0 %v3398_v34 }
 0x18e   :  { %3166 = vmatpush3.bf16.msra.mxu0 %v3165_v56  ;;  %v1772_v56 = vand.u32 4294901760, %v1771_v15  ;;  %v1828_v15 = vand.u32 4294901760, %v1827_v23 }
 0x18f   :  { %3167 = vmatprep.subr.bf16.mxu0 %v3398_v34 }
 0x192   :  { %3169 = vmatpush3.bf16.msra.mxu0 %v3168_v55  ;;  %v3228_v55 = vpack.c.bf16 %v1772_v56, %v1765_v59  ;;  %v4063_v59 = vand.u32 4294901760, %v3856_v35 }
 0x193   :  { %3170 = vmatprep.subr.bf16.mxu0 %v3398_v34 }
 0x196   :  { %3172 = vmatpush3.bf16.msra.mxu0 %v3171_v6  ;;  %v1779_v6 = vand.u32 4294901760, %v1778_v25 }
 0x197   :  { %3173 = vmatprep.subr.bf16.mxu0 %v3398_v34 }
 0x199   :  { %2788 = vmatmul.mubr.f32.vlgmr.msra.gmra.mrb[12].mxu0 %v3645_v49 }
 0x19a   :  { %3175 = vmatpush3.bf16.msra.mxu0 %v3485_v43  ;;  %2822 = vmatprep.mubr.msk.f32.mxu0 %vm3397_vm0, %v3396_v0  ;;  %v1630_v43 = vld [vmem:[#allocation2 + $0xf8] sm:$0xff] }
 0x19b   :  { %3176 = vmatprep.subr.bf16.mxu0 %v3398_v34 }
 0x19e   :  { %3178 = vmatpush3.bf16.msra.mxu0 %v3493_v50  ;;  %v1631_v50 = vld [vmem:[#allocation2 + $0x100] sm:$0xff] }
 0x19f   :  { %3179 = vmatprep.subr.bf16.mxu0 %v3398_v34 }
 0x1a2   :  { %3181 = vmatpush3.bf16.msra.mxu0 %v3501_v57  ;;  %v1672_v57 = vand.u32 4294901760, %v1630_v43 }
 0x1a3   :  { %3182 = vmatprep.subr.bf16.mxu0 %v3398_v34 }
 0x1a4   :  { %v3847_v63 = vsub.f32 %v1630_v43, %v1672_v57  ;;  %v1786_v43 = vand.u32 4294901760, %v1785_v26  ;;  %v1834_v26 = vsub.f32 %v3856_v35, %v4063_v59 }
 0x1a6   :  { %3184 = vmatpush3.bf16.msra.mxu0 %v3509_v1  ;;  %v1675_v1 = vand.u32 4294901760, %v1631_v50  ;;  %v1805_v30 = vand.u32 4294901760, %v3847_v63 }
 0x1a7   :  { %3185 = vmatprep.subr.bf16.mxu0 %v3398_v34 }
 0x1a8   :  { %v3829_v27 = vpack.c.bf16 %v1675_v1, %v1672_v57  ;;  %v3849_v11 = vsub.f32 %v1631_v50, %v1675_v1  ;;  %v1791_v50 = vand.u32 4294901760, %v3705_v54  ;;  %v1798_v57 = vand.u32 4294901760, %v3707_v4 }
 0x1a9   :  { %v3231_v1 = vpack.c.bf16 %v1786_v43, %v1779_v6  ;;  %v1835_v43 = vand.u32 4294901760, %v1834_v26 }
 0x1aa   :  { %3187 = vmatpush3.bf16.msra.mxu0 %v3517_v8  ;;  %v1632_v8 = vld [vmem:[#allocation2 + $0x108] sm:$0xff]  ;;  %3214 = vmatpush3.bf16.msra.mxu1 %v3829_v27  ;;  %v1799_v28 = vsub.f32 %v3707_v4, %v1798_v57 }
 0x1ab   :  { %3188 = vmatprep.subr.bf16.mxu0 %v3398_v34  ;;  %3215 = vmatprep.subr.bf16.mxu1 %v3398_v34 }
 0x1ae   :  { %3190 = vmatpush3.bf16.msra.mxu0 %v3521_v13  ;;  %v1678_v13 = vand.u32 4294901760, %v1632_v8 }
 0x1af   :  { %3191 = vmatprep.subr.bf16.mxu0 %v3398_v34 }
 0x1b0   :  { %v3851_v37 = vsub.f32 %v1632_v8, %v1678_v13  ;;  %v1792_v8 = vsub.f32 %v3705_v54, %v1791_v50 }
 0x1b2   :  { %3193 = vmatpush3.bf16.msra.mxu0 %v3525_v18  ;;  %v3833_v18 = vpack.c.bf16 %v1681_v29, %v1678_v13  ;;  %v1793_v13 = vand.u32 4294901760, %v1792_v8  ;;  %v1800_v29 = vand.u32 4294901760, %v1799_v28 }
 0x1b3   :  { %3194 = vmatprep.subr.bf16.mxu0 %v3398_v34 }
 0x1b4   :  { %3217 = vmatpush3.bf16.msra.mxu1 %v3833_v18 }
 0x1b5   :  { %3218 = vmatprep.subr.bf16.mxu1 %v3398_v34 }
 0x1b6   :  { %3196 = vmatpush3.bf16.msra.mxu0 %v3543_v31  ;;  %v1635_v31 = vld [vmem:[#allocation2 + $0x120] sm:$0xff] }
 0x1b7   :  { %v1687_v33 = vand.u32 4294901760, %v1635_v31 }
 0x1b9   :  { %2823 = vmatmul.mubr.f32.vlgmr.msra.gmra.mrb[12].mxu0 %v3645_v49  ;;  %v1735_v49 = vand.u32 4294901760, %v3681_v16  ;;  %v3839_v7 = vpack.c.bf16 %v1687_v33, %v1684_v32  ;;  %v3858_v36 = vsub.f32 %v1635_v31, %v1687_v33  ;;  %v1812_v31 = vand.u32 4294901760, %v3849_v11 }
 0x1ba   :  { %v3234_v32 = vpack.c.bf16 %v1800_v29, %v1793_v13  ;;  %v1806_v33 = vsub.f32 %v3847_v63, %v1805_v30  ;;  %v3246_v13 = vpack.c.bf16 %v3683_v40, %v3681_v16  ;;  %v3249_v29 = vpack.c.bf16 %v3689_v10, %v3685_v41 }
 0x1bb   :  { %v1736_v60 = vsub.f32 %v3681_v16, %v1735_v49  ;;  %3220 = vmatpush3.bf16.msra.mxu1 %v3839_v7  ;;  %v4062_v56 = vand.u32 4294901760, %v3858_v36  ;;  %v3267_v23 = vpack.c.bf16 %v3858_v36, %v3856_v35  ;;  %v3300_v16 = vpack.c.bf16 %v1770_v51, %v1763_v24 }
 0x1bc   :  { %3221 = vmatprep.subr.bf16.mxu1 %v3398_v34  ;;  %v1807_v61 = vand.u32 4294901760, %v1806_v33  ;;  %v3252_v33 = vpack.c.bf16 %v3697_v62, %v3691_v20  ;;  %v3303_v40 = vpack.c.bf16 %v1784_v3, %v1777_v2  ;;  %v3306_v41 = vpack.c.bf16 %v1798_v57, %v1791_v50 }
 0x1bd   :  { %v1737_v39 = vand.u32 4294901760, %v1736_v60  ;;  %v1813_v60 = vsub.f32 %v3849_v11, %v1812_v31  ;;  %v1841_v6 = vsub.f32 %v3858_v36, %v4062_v56  ;;  %v3309_v10 = vpack.c.bf16 %v1812_v31, %v1805_v30 }
 0x1be   :  { %v4082_v20 = vand.u32 4294901760, %v3851_v37  ;;  %v4083_v62 = vand.u32 4294901760, %v3853_v38 }
 0x1bf   :  { %v3863_v44 = vpack.c.bf16 %v1744_v47, %v1737_v39  ;;  %v1814_v39 = vand.u32 4294901760, %v1813_v60  ;;  %v4065_v47 = vand.u32 4294901760, %v3851_v37  ;;  %v1842_v8 = vand.u32 4294901760, %v1841_v6 }
 0x1c0   :  { %v3255_v60 = vpack.c.bf16 %v3703_v53, %v3701_v46  ;;  %v3312_v46 = vpack.c.bf16 %v4083_v62, %v4082_v20  ;;  %v4084_v53 = vand.u32 4294901760, %v3856_v35 }
 0x1c1   :  { %v3237_v42 = vpack.c.bf16 %v1814_v39, %v1807_v61  ;;  %v1820_v52 = vsub.f32 %v3851_v37, %v4065_v47  ;;  %v3243_v28 = vpack.c.bf16 %v1842_v8, %v1835_v43  ;;  %v3258_v61 = vpack.c.bf16 %v3707_v4, %v3705_v54 }
 0x1c2   :  { %v3261_v39 = vpack.c.bf16 %v3849_v11, %v3847_v63  ;;  %v4085_v54 = vand.u32 4294901760, %v3858_v36 }
 0x1c3   :  { %v1821_v5 = vand.u32 4294901760, %v1820_v52  ;;  %v3264_v52 = vpack.c.bf16 %v3853_v38, %v3851_v37 }
 0x1c4   :  { %v3315_v4 = vpack.c.bf16 %v4085_v54, %v4084_v53 }
 0x1c5   :  { %v3240_v25 = vpack.c.bf16 %v1828_v15, %v1821_v5  ;;  %v2305_v5 = vld [vmem:[#allocation2 + $0xa0] ss:$0 sm:$0xff] }
 0x28c   :  { %v1615_v15 = vpop.f32.mrb[12].mxu0 }
 0x28d   :  { %v3341_v26 = vadd.f32 %v2305_v5, %v1615_v15  ;;  %v2824_v6 = vpop.f32.mrb[13].mxu0 }
 0x28f   :  { %v1619_v43 = vmax.f32 %v3341_v26, 0.0 }
 0x291   :  { %v3935_v8 = vand.u32 4294901760, %v1619_v43 }
 0x293   :  { %v1723_v56 = vsub.f32 %v1619_v43, %v3935_v8 }
 0x295   :  { %v1724_v59 = vand.u32 4294901760, %v1723_v56 }
 0x297   :  { %v1725_v45 = vsub.f32 %v1723_v56, %v1724_v59 }
 0x299   :  { %v1726_v47 = vand.u32 4294901760, %v1725_v45 }
 0x29b   :  { %2858 = vmatmul.mubr.f32.vlgmr.msra.gmra.mrb[12].mxu1 %v1726_v47 }
 0x29c   :  { %3223 = vmatpush3.bf16.msra.mxu1 %v3863_v44  ;;  %2892 = vmatprep.mubr.msk.f32.mxu1 %vm3397_vm0, %v3396_v0  ;;  %v3294_v44 = vpack.c.bf16 %v1742_v9, %v1735_v49  ;;  %v2308_v9 = vld [vmem:[#allocation2 + $0x138] ss:$0 sm:$0xff] }
 0x29d   :  { %3224 = vmatprep.subr.bf16.mxu1 %v3398_v34 }
 0x2a0   :  { %3226 = vmatpush3.bf16.msra.mxu1 %v3225_v58  ;;  %v3297_v58 = vpack.c.bf16 %v1756_v21, %v1749_v48 }
 0x2a1   :  { %3227 = vmatprep.subr.bf16.mxu1 %v3398_v34 }
 0x2a4   :  { %3229 = vmatpush3.bf16.msra.mxu1 %v3228_v55 }
 0x2a5   :  { %3230 = vmatprep.subr.bf16.mxu1 %v3398_v34 }
 0x2a8   :  { %3232 = vmatpush3.bf16.msra.mxu1 %v3231_v1 }
 0x2a9   :  { %3233 = vmatprep.subr.bf16.mxu1 %v3398_v34 }
 0x2ac   :  { %3235 = vmatpush3.bf16.msra.mxu1 %v3234_v32 }
 0x2ad   :  { %3236 = vmatprep.subr.bf16.mxu1 %v3398_v34 }
 0x2b0   :  { %3238 = vmatpush3.bf16.msra.mxu1 %v3237_v42 }
 0x2b1   :  { %3239 = vmatprep.subr.bf16.mxu1 %v3398_v34 }
 0x2b4   :  { %3241 = vmatpush3.bf16.msra.mxu1 %v3240_v25 }
 0x2b5   :  { %3242 = vmatprep.subr.bf16.mxu1 %v3398_v34 }
 0x2b8   :  { %3244 = vmatpush3.bf16.msra.mxu1 %v3243_v28 }
 0x2b9   :  { %3245 = vmatprep.subr.bf16.mxu1 %v3398_v34 }
 0x2bb   :  { %2893 = vmatmul.mubr.f32.vlgmr.msra.gmra.mrb[12].mxu1 %v3935_v8 }
 0x2bc   :  { %3247 = vmatpush3.bf16.msra.mxu1 %v3246_v13  ;;  %2927 = vmatprep.mubr.msk.f32.mxu1 %vm3397_vm0, %v3396_v0 }
 0x2bd   :  { %3248 = vmatprep.subr.bf16.mxu1 %v3398_v34 }
 0x2c0   :  { %3250 = vmatpush3.bf16.msra.mxu1 %v3249_v29 }
 0x2c1   :  { %3251 = vmatprep.subr.bf16.mxu1 %v3398_v34 }
 0x2c4   :  { %3253 = vmatpush3.bf16.msra.mxu1 %v3252_v33 }
 0x2c5   :  { %3254 = vmatprep.subr.bf16.mxu1 %v3398_v34 }
 0x2c8   :  { %3256 = vmatpush3.bf16.msra.mxu1 %v3255_v60 }
 0x2c9   :  { %3257 = vmatprep.subr.bf16.mxu1 %v3398_v34 }
 0x2cc   :  { %3259 = vmatpush3.bf16.msra.mxu1 %v3258_v61 }
 0x2cd   :  { %3260 = vmatprep.subr.bf16.mxu1 %v3398_v34 }
 0x2d0   :  { %3262 = vmatpush3.bf16.msra.mxu1 %v3261_v39 }
 0x2d1   :  { %3263 = vmatprep.subr.bf16.mxu1 %v3398_v34 }
 0x2d4   :  { %3265 = vmatpush3.bf16.msra.mxu1 %v3264_v52 }
 0x2d5   :  { %3266 = vmatprep.subr.bf16.mxu1 %v3398_v34 }
 0x2d8   :  { %3268 = vmatpush3.bf16.msra.mxu1 %v3267_v23 }
 0x2d9   :  { %3269 = vmatprep.subr.bf16.mxu1 %v3398_v34 }
 0x2db   :  { %2928 = vmatmul.mubr.f32.vlgmr.msra.gmra.mrb[12].mxu1 %v1723_v56 }
 0x2dc   :  { %3271 = vmatpush3.bf16.msra.mxu1 %v3679_v14  ;;  %2962 = vmatprep.mubr.msk.f32.mxu1 %vm3397_vm0, %v3396_v0 }
 0x2dd   :  { %3272 = vmatprep.subr.bf16.mxu1 %v3398_v34 }
 0x2e0   :  { %3274 = vmatpush3.bf16.msra.mxu1 %v3687_v19 }
 0x2e1   :  { %3275 = vmatprep.subr.bf16.mxu1 %v3398_v34 }
 0x2e4   :  { %3277 = vmatpush3.bf16.msra.mxu1 %v3713_v17 }
 0x2e5   :  { %3278 = vmatprep.subr.bf16.mxu1 %v3398_v34 }
 0x2e8   :  { %3280 = vmatpush3.bf16.msra.mxu1 %v3721_v12 }
 0x2e9   :  { %3281 = vmatprep.subr.bf16.mxu1 %v3398_v34 }
 0x2ec   :  { %3283 = vmatpush3.bf16.msra.mxu1 %v3729_v22 }
 0x2ed   :  { %3284 = vmatprep.subr.bf16.mxu1 %v3398_v34 }
 0x2f0   :  { %3286 = vmatpush3.bf16.msra.mxu1 %v3829_v27 }
 0x2f1   :  { %3287 = vmatprep.subr.bf16.mxu1 %v3398_v34 }
 0x2f4   :  { %3289 = vmatpush3.bf16.msra.mxu1 %v3833_v18 }
 0x2f5   :  { %3290 = vmatprep.subr.bf16.mxu1 %v3398_v34 }
 0x2f8   :  { %3292 = vmatpush3.bf16.msra.mxu1 %v3839_v7 }
 0x2f9   :  { %3293 = vmatprep.subr.bf16.mxu1 %v3398_v34 }
 0x2fb   :  { %2963 = vmatmul.mubr.f32.vlgmr.msra.gmra.mrb[12].mxu1 %v1724_v59 }
 0x2fc   :  { %3295 = vmatpush3.bf16.msra.mxu1 %v3294_v44  ;;  %2997 = vmatprep.mubr.msk.f32.mxu1 %vm3397_vm0, %v3396_v0 }
 0x2fd   :  { %3296 = vmatprep.subr.bf16.mxu1 %v3398_v34 }
 0x300   :  { %3298 = vmatpush3.bf16.msra.mxu1 %v3297_v58 }
 0x301   :  { %3299 = vmatprep.subr.bf16.mxu1 %v3398_v34 }
 0x304   :  { %3301 = vmatpush3.bf16.msra.mxu1 %v3300_v16 }
 0x305   :  { %3302 = vmatprep.subr.bf16.mxu1 %v3398_v34 }
 0x308   :  { %3304 = vmatpush3.bf16.msra.mxu1 %v3303_v40 }
 0x309   :  { %3305 = vmatprep.subr.bf16.mxu1 %v3398_v34 }
 0x30c   :  { %3307 = vmatpush3.bf16.msra.mxu1 %v3306_v41 }
 0x30d   :  { %3308 = vmatprep.subr.bf16.mxu1 %v3398_v34 }
 0x310   :  { %3310 = vmatpush3.bf16.msra.mxu1 %v3309_v10 }
 0x311   :  { %3311 = vmatprep.subr.bf16.mxu1 %v3398_v34 }
 0x314   :  { %3313 = vmatpush3.bf16.msra.mxu1 %v3312_v46 }
 0x315   :  { %3314 = vmatprep.subr.bf16.mxu1 %v3398_v34 }
 0x318   :  { %3316 = vmatpush3.bf16.msra.mxu1 %v3315_v4 }
 0x319   :  { %3317 = vmatprep.subr.bf16.mxu1 %v3398_v34 }
 0x31b   :  { %2998 = vmatmul.mubr.f32.vlgmr.msra.gmra.mrb[12].mxu1 %v3935_v8 }
 0x31c   :  { %3319 = vmatpush3.bf16.msra.mxu1 %v3679_v14  ;;  %3032 = vmatprep.mubr.msk.f32.mxu1 %vm3397_vm0, %v3396_v0  ;;  %v2306_v0 = vld [vmem:[#allocation2 + $0x128] ss:$0 sm:$0xff] }
 0x31d   :  { %3320 = vmatprep.subr.bf16.mxu1 %v3398_v34 }
 0x320   :  { %3322 = vmatpush3.bf16.msra.mxu1 %v3687_v19 }
 0x321   :  { %3323 = vmatprep.subr.bf16.mxu1 %v3398_v34 }
 0x324   :  { %3325 = vmatpush3.bf16.msra.mxu1 %v3713_v17 }
 0x325   :  { %3326 = vmatprep.subr.bf16.mxu1 %v3398_v34 }
 0x328   :  { %3328 = vmatpush3.bf16.msra.mxu1 %v3721_v12  ;;  %v2307_v12 = vld [vmem:[#allocation2 + $0x130] ss:$0 sm:$0xff] }
 0x329   :  { %3329 = vmatprep.subr.bf16.mxu1 %v3398_v34 }
 0x32c   :  { %3331 = vmatpush3.bf16.msra.mxu1 %v3729_v22 }
 0x32d   :  { %3332 = vmatprep.subr.bf16.mxu1 %v3398_v34 }
 0x330   :  { %3334 = vmatpush3.bf16.msra.mxu1 %v3829_v27 }
 0x331   :  { %3335 = vmatprep.subr.bf16.mxu1 %v3398_v34 }
 0x334   :  { %3337 = vmatpush3.bf16.msra.mxu1 %v3833_v18 }
 0x335   :  { %3338 = vmatprep.subr.bf16.mxu1 %v3398_v34 }
 0x338   :  { %3340 = vmatpush3.bf16.msra.mxu1 %v3839_v7 }
 0x33b   :  { %3033 = vmatmul.mubr.f32.vlgmr.msra.gmra.mrb[12].mxu1 %v3935_v8 }
 0x40e   :  { %v2278_v14 = vpop.f32.mrb[12].mxu1 }
 0x40f   :  { %v3342_v19 = vadd.f32 %v2306_v0, %v2278_v14  ;;  %v3034_v17 = vpop.f32.mrb[13].mxu1 }
 0x411   :  { %v2282_v22 = vmax.f32 %v3342_v19, 0.0 }
 0x413   :  { %v2289_v49 = vmul.f32 %v2307_v12, %v2282_v22 }
 0x415   :  { %2290 = vadd.xlane.f32.xlu0 %v2289_v49 }
 0x4a2   :  { %v2291_v27 = vpop.xlane.xlu0 %2290 }
 0x4a3   :  { %v2296_v63 = vadd.f32 %v2308_v9, %v2291_v27 }
 0x4a5   :  { %2298 = vst.msk [vmem:[%s4045_s3] sm:$0xff] %vm2297_vm4, %v2296_v63 }
 0x4a6   :  { %2303 = vsyncpa [#allocation3], 1 }

</bundles_post_ra>
